<compile_context>
chip_gen: v6e
topology: v6e:2x2x1
jax: 0.10.0
libtpu: 0.0.40
codegen_flags: <defaults>
</compile_context>

<pallas_src>
import functools

import jax
import jax.numpy as jnp
from jax.experimental import pallas as pl
from jax.experimental.pallas import tpu as pltpu


def _pad_kernel(x_ref, o_ref, *, interior_start, interior_len, out_len):
    # x_ref: (nb, C*S*S) flat, H/W-pre-padded input tile.
    # o_ref: (nb, S*S*S) flat output tile.
    nb = o_ref.shape[0]
    lo = interior_start
    hi = interior_start + interior_len

    # Zero only the channel-pad prefix / suffix (the interior is fully
    # overwritten below, so re-zeroing it would just waste store-slot cycles).
    if lo > 0:
        o_ref[:, :lo] = jnp.zeros((nb, lo), o_ref.dtype)
    if hi < out_len:
        o_ref[:, hi:] = jnp.zeros((nb, out_len - hi), o_ref.dtype)

    # Single contiguous, lane-dense interior copy per image.
    o_ref[:, lo:hi] = x_ref[...]


def _tpu_chip_info():
    """Return (vmem_capacity_bytes, has_two_tensorcores) with safe fallbacks."""
    vmem_cap = 64 * 1024 * 1024  # conservative default = v7x per-core VMEM
    try:
        vmem_cap = int(pltpu.get_tpu_info().vmem_capacity_bytes)
    except Exception:
        pass
    multicore = False
    try:
        kind = jax.devices()[0].device_kind.lower()
        multicore = "7" in kind  # v7x exposes 2 TensorCores per chip
    except Exception:
        pass
    return vmem_cap, multicore


def zero_pad_imgs(x, size: int):
    """Pallas TPU implementation of ZeroPadImgs.forward."""
    if x.ndim == 3:
        return zero_pad_imgs(x[None], size)[0]
    assert x.ndim == 4, "only 3D or 4D inputs supported"

    N, C, H, W = x.shape
    S = size
    # TODO(synk): torch F.pad with negative pad (size < dim) would crop; not
    # implemented here -- we assume size >= each padded dim.
    assert S >= C and S >= H and S >= W

    def before(d):
        return (S - d) // 2 + (S - d) % 2

    def after(d):
        return (S - d) // 2

    oc = before(C)

    # Wrapper-side H/W pre-pad (perf review): turns the kernel's interior
    # placement into one contiguous copy per image.  Traffic delta is tiny
    # compared with the S^3 output write.
    x_hw = jnp.pad(
        x,
        ((0, 0), (0, 0), (before(H), after(H)), (before(W), after(W))),
        mode="constant",
        constant_values=0,
    )

    flat_in = C * S * S
    flat_out = S * S * S
    itemsize = jnp.dtype(x.dtype).itemsize

    # Free reshape of contiguous (N, C, S, S): one lane-dense row per image.
    x_flat = x_hw.reshape(N, flat_in)

    # --- Per-chip block sizing -------------------------------------------
    mib = 1024 * 1024
    vmem_cap, is_multicore = _tpu_chip_info()
    if vmem_cap >= 96 * mib:
        # v5e / v6e: 128 MiB physical VMEM -> large blocks, fewer grid steps.
        block_budget = 96 * mib
    else:
        # v7x (64 MiB) or unknown: leave headroom for Mosaic internal scratch.
        block_budget = 26 * mib

    # Double-buffered input + output blocks per grid step.
    bytes_per_item = 2 * (flat_in + flat_out) * itemsize
    if bytes_per_item > block_budget:
        # TODO(synk): tile the flattened output (lane) dim for very large `size`.
        raise NotImplementedError(
            f"padded volume per image ({bytes_per_item} B double-buffered) "
            f"exceeds the VMEM block budget ({block_budget} B)")

    # Dtype-aware sublane packing: f32 -> 8 rows/vreg, bf16 -> 16, int8 -> 32.
    sub = 8 * max(1, 4 // itemsize)

    nb_budget = max(1, block_budget // bytes_per_item)
    if N <= nb_budget:
        nb = N
        if is_multicore and N > 8:
            # v7x: 2 TensorCores -> force >= 2 parallel grid steps so both
            # cores get work (8-row rounding; an idle core costs more than a
            # partially packed sublane group).
            nb = ((pl.cdiv(N, 2) + 7) // 8) * 8
    else:
        nb = (nb_budget // sub) * sub if nb_budget >= sub else nb_budget
    nb = max(1, min(nb, N))

    block_bytes = nb * bytes_per_item
    # VMEM limit = actual working set + margin, capped below physical VMEM.
    vmem_limit = min(vmem_cap - 8 * mib, max(32 * mib, block_bytes + 16 * mib))

    grid = (pl.cdiv(N, nb),)

    kernel = functools.partial(
        _pad_kernel,
        interior_start=oc * S * S,
        interior_len=flat_in,
        out_len=flat_out,
    )

    out_flat = pl.pallas_call(
        kernel,
        out_shape=jax.ShapeDtypeStruct((N, flat_out), x.dtype),
        grid=grid,
        in_specs=[pl.BlockSpec((nb, flat_in), lambda i: (i, 0))],
        out_specs=pl.BlockSpec((nb, flat_out), lambda i: (i, 0)),
        compiler_params=pltpu.CompilerParams(
            dimension_semantics=("parallel",),
            vmem_limit_bytes=int(vmem_limit),
        ),
        cost_estimate=pl.CostEstimate(
            flops=0,
            transcendentals=0,
            bytes_accessed=N * (flat_out + flat_in) * itemsize,
        ),
    )(x_flat)

    # Free reshape back to the padded NCHW layout.
    return out_flat.reshape(N, S, S, S)


def _reference(x, size: int):
    """Pure-JAX reference matching the PyTorch module."""
    if x.ndim == 3:
        return _reference(x[None], size)[0]
    N, C, H, W = x.shape
    S = size

    def pads(d):
        return ((S - d) // 2 + (S - d) % 2, (S - d) // 2)

    return jnp.pad(
        x,
        ((0, 0), pads(C), pads(H), pads(W)),
        mode="constant",
        constant_values=0,
    )


if __name__ == "__main__":
    key = jax.random.PRNGKey(0)
    size = 24

    # 4D case: (N, C, H, W) -> (N, S, S, S)
    x4 = jax.random.normal(key, (2, 4, 16, 16), dtype=jnp.float32)
    out4 = jax.block_until_ready(zero_pad_imgs(x4, size))
    ref4 = _reference(x4, size)
    assert out4.shape == (2, size, size, size), out4.shape
    assert jnp.allclose(out4, ref4), "4D mismatch"

    # 3D case: (D0, D1, D2) -> (S, S, S)
    k2 = jax.random.split(key)[0]
    x3 = jax.random.normal(k2, (4, 10, 12), dtype=jnp.float32)
    out3 = jax.block_until_ready(zero_pad_imgs(x3, size))
    ref3 = _reference(x3, size)
    assert out3.shape == (size, size, size), out3.shape
    assert jnp.allclose(out3, ref3), "3D mismatch"

    print("KERNEL_OK")
</pallas_src>

<mosaic_0001>
module attributes {stable_mosaic.version = 11 : i64} {
  func.func @_pad_kernel(%arg0: i32, %arg1: memref<2x2304xf32, #tpu.memory_space<vmem>>, %arg2: memref<2x13824xf32, #tpu.memory_space<vmem>>) attributes {dimension_semantics = [#tpu.dimension_semantics<parallel>], iteration_bounds = array<i64: 1>, scalar_prefetch = 0 : i64, scratch_operands = 0 : i64, tpu.core_type = #tpu.core_type<tc>, window_params = [{transform_indices = @transform_0, window_bounds = array<i64: 2, 2304>}, {transform_indices = @transform_1, window_bounds = array<i64: 2, 13824>}]} {
    %cst = arith.constant 0.000000e+00 : f32
    %0 = vector.broadcast %cst : f32 to vector<2x5760xf32>
    %c0 = arith.constant 0 : index
    %c0_0 = arith.constant 0 : index
    %1 = vector.load %arg2[%c0, %c0_0] : memref<2x13824xf32, #tpu.memory_space<vmem>>, vector<2x5760xf32>
    tpu.vector_store %arg2[%c0, %c0_0], %0 {strides = array<i32>} : memref<2x13824xf32, #tpu.memory_space<vmem>>, vector<2x5760xf32>,
    %cst_1 = arith.constant 0.000000e+00 : f32
    %2 = vector.broadcast %cst_1 : f32 to vector<2x5760xf32>
    %c0_2 = arith.constant 0 : index
    %c8064 = arith.constant 8064 : index
    %3 = vector.load %arg2[%c0_2, %c8064] : memref<2x13824xf32, #tpu.memory_space<vmem>>, vector<2x5760xf32>
    tpu.vector_store %arg2[%c0_2, %c8064], %2 {strides = array<i32>} : memref<2x13824xf32, #tpu.memory_space<vmem>>, vector<2x5760xf32>,
    %c0_3 = arith.constant 0 : index
    %c0_4 = arith.constant 0 : index
    %4 = vector.load %arg1[%c0_3, %c0_4] : memref<2x2304xf32, #tpu.memory_space<vmem>>, vector<2x2304xf32>
    %c0_5 = arith.constant 0 : index
    %c5760 = arith.constant 5760 : index
    %5 = vector.load %arg2[%c0_5, %c5760] : memref<2x13824xf32, #tpu.memory_space<vmem>>, vector<2x2304xf32>
    tpu.vector_store %arg2[%c0_5, %c5760], %4 {strides = array<i32>} : memref<2x13824xf32, #tpu.memory_space<vmem>>, vector<2x2304xf32>,
    return
  }
  func.func @transform_0(%arg0: i32) -> (i32, i32) {
    %c0_i32 = arith.constant 0 : i32
    %c0_i32_0 = arith.constant 0 : i32
    return %arg0, %c0_i32 : i32, i32
  }
  func.func @transform_1(%arg0: i32) -> (i32, i32) {
    %c0_i32 = arith.constant 0 : i32
    %c0_i32_0 = arith.constant 0 : i32
    return %arg0, %c0_i32 : i32, i32
  }
}

</mosaic_0001>

<bundles_post_ra>
// kernel: tpu_custom_call.1
= control target key start
LH: loop header
LB: loop body
LE: loop exit
PB: predicated region body
PF: predicated region fallthrough
CT: control target
= control target key end

     0   :  { %6 = vsyncpa [#allocation3], 0  ;;  %s136_s0 = inlined_call_operand.hbm [shape: f32[2,2304], index: 0, kind: input, shape index: {}]   ;;  %s137_s1 = inlined_call_operand.hbm [shape: f32[2,13824], index: 1, kind: output, shape index: {}]  }
   0x1   :  { %7 = vsyncpa [#allocation4], 0  ;;  %s117_s6 = smov [#allocation2]  }
   0x2   :  { %s14_s7 = sshll.u32 %s117_s6, 4  ;;  %s15_s7 = int_to_ptr.vmem [resolvable:$true] %s14_s7 }
   0x3   :  { %s81_s8 = scalar_lea.vmem %s15_s7, 576  ;;  %p86_p1 = scmp.lt.s32.totalorder %s15_s7, %s15_s7 }
   0x4   :  { %p82_p0 = scmp.ne.s32.totalorder %s15_s7, %s81_s8  ;;  %p87_p2 = scmp.lt.s32.totalorder %s81_s8, %s81_s8 }
   0x6   :  { %p88_p3 = por %p87_p2, %p86_p1 }
   0x8   :  { %p89_p4 = pnand %p88_p3, %p82_p0 }
   0xa   :  { %92 = shalt.err (!%p89_p4)
}
   0xb   :  { %17 = dma.hbm_to_vmem [thread:$0]  %s136_s0, 576, %s15_s7, [#allocation3]  }
   0xc   :  { %113 = dma.done.wait [#allocation3], 576  }
   0xd   :  { %114 = vsyncadd [#allocation3], 4294966720  ;;  %v118_v0 = vmov 0.0   ;;  %s119_s0 = smov [#allocation5]   ;;  %v45_v1 = vld [vmem:[#allocation2] sm:$0xff]  ;;  %v46_v2 = vld [vmem:[#allocation2 + $0x8] sm:$0xff] }
   0xe   :  { %21 = vst [vmem:[#allocation5] sm:$0xff] %v118_v0  ;;  %22 = vst [vmem:[#allocation5 + $0x8] sm:$0xff] %v118_v0  ;;  %s61_s11 = sshll.u32 %s119_s0, 4  ;;  %v47_v3 = vld [vmem:[#allocation2 + $0x10] sm:$0xff]  ;;  %v48_v4 = vld [vmem:[#allocation2 + $0x18] sm:$0xff]  ;;  %s62_s11 = int_to_ptr.vmem [resolvable:$true] %s61_s11 }
   0xf   :  { %23 = vst [vmem:[#allocation5 + $0x10] sm:$0xff] %v118_v0  ;;  %24 = vst [vmem:[#allocation5 + $0x18] sm:$0xff] %v118_v0  ;;  %v49_v5 = vld [vmem:[#allocation2 + $0x20] sm:$0xf]  ;;  %s93_s12 = scalar_lea.vmem %s62_s11, 3456  ;;  %p98_p6 = scmp.lt.s32.totalorder %s62_s11, %s62_s11 }
  0x10   :  { %25 = vst [vmem:[#allocation5 + $0x20] sm:$0xff] %v118_v0  ;;  %26 = vst [vmem:[#allocation5 + $0x28] sm:$0xff] %v118_v0  ;;  %p94_p5 = scmp.ne.s32.totalorder %s62_s11, %s93_s12  ;;  %p99_p7 = scmp.lt.s32.totalorder %s93_s12, %s93_s12 }
  0x11   :  { %27 = vst [vmem:[#allocation5 + $0x30] sm:$0xff] %v118_v0  ;;  %28 = vst [vmem:[#allocation5 + $0x38] sm:$0xff] %v118_v0 }
  0x12   :  { %29 = vst [vmem:[#allocation5 + $0x40] sm:$0xff] %v118_v0  ;;  %30 = vst [vmem:[#allocation5 + $0x48] sm:$0xff] %v118_v0  ;;  %p100_p8 = por %p99_p7, %p98_p6 }
  0x13   :  { %31 = vst [vmem:[#allocation5 + $0x50] sm:$0xff] %v118_v0  ;;  %32 = vst [vmem:[#allocation5 + $0x58] sm:$0x3] %v118_v0 }
  0x14   :  { %33 = vst [vmem:[#allocation5 + $0x7e] sm:$0xff] %v118_v0  ;;  %34 = vst [vmem:[#allocation5 + $0x86] sm:$0xff] %v118_v0  ;;  %p101_p9 = pnand %p100_p8, %p94_p5 }
  0x15   :  { %35 = vst [vmem:[#allocation5 + $0x8e] sm:$0xff] %v118_v0  ;;  %36 = vst [vmem:[#allocation5 + $0x96] sm:$0xff] %v118_v0 }
  0x16   :  { %37 = vst [vmem:[#allocation5 + $0x9e] sm:$0xff] %v118_v0  ;;  %38 = vst [vmem:[#allocation5 + $0xa6] sm:$0xff] %v118_v0 }
  0x17   :  { %39 = vst [vmem:[#allocation5 + $0xae] sm:$0xff] %v118_v0  ;;  %40 = vst [vmem:[#allocation5 + $0xb6] sm:$0xff] %v118_v0 }
  0x18   :  { %41 = vst [vmem:[#allocation5 + $0xbe] sm:$0xff] %v118_v0  ;;  %42 = vst [vmem:[#allocation5 + $0xc6] sm:$0xff] %v118_v0 }
  0x19   :  { %43 = vst [vmem:[#allocation5 + $0xce] sm:$0xff] %v118_v0  ;;  %44 = vst [vmem:[#allocation5 + $0xd6] sm:$0x3] %v118_v0 }
  0x1a   :  { %50 = vst [vmem:[#allocation5 + $0x5a] sm:$0xff] %v45_v1  ;;  %51 = vst [vmem:[#allocation5 + $0x62] sm:$0xff] %v46_v2 }
  0x1b   :  { %52 = vst [vmem:[#allocation5 + $0x6a] sm:$0xff] %v47_v3  ;;  %53 = vst [vmem:[#allocation5 + $0x72] sm:$0xff] %v48_v4 }
  0x1c   :  { %54 = vst [vmem:[#allocation5 + $0x7a] sm:$0xf] %v49_v5 }
  0x1d   :  { %104 = shalt.err (!%p101_p9)
}
  0x1e   :  { %64 = dma.vmem_to_hbm [thread:$0]  %s62_s11, 3456, %s137_s1, [#allocation4]  }
  0x1f   :  { %115 = dma.done.wait [#allocation4], 3456  }
  0x20   :  { %116 = vsyncadd [#allocation4], 4294963840 }
  0x21   :  { %68 = vsyncpa [#allocation3], 1 }
  0x22   :  { %69 = vsyncpa [#allocation4], 1 }

</bundles_post_ra>
